<compile_context>
chip_gen: v6e
topology: v6e:2x2x1
jax: 0.10.0
libtpu: 0.0.40
codegen_flags: <defaults>
</compile_context>

<pallas_src>
import functools

import jax
import jax.numpy as jnp
from jax import lax
from jax.experimental import pallas as pl
from jax.experimental.pallas import tpu as pltpu


def _ls_ce_kernel(x_ref, t_ref, o_ref, *, smoothing: float, n_rows: int):
    """One grid step: (tile_n, C) logits + (tile_n, 1) targets -> (1, 128) partial sum."""
    x = x_ref[...]                                   # (tile_n, C) input dtype
    tn, c = x.shape

    on_val = jnp.float32(1.0 - smoothing)
    off_val = jnp.float32(smoothing / max(c - 1, 1))  # guard degenerate C == 1

    # Row max in the input dtype (exact op, packed-bf16 friendly on v6e/v7x).
    m = jnp.max(x, axis=-1, keepdims=True)            # (tile_n, 1)
    # exp + sum accumulate in f32; cast only inside this pass.
    e = jnp.exp((x - m).astype(jnp.float32))          # (tile_n, C) f32 (transient)
    lse = m.astype(jnp.float32) + jnp.log(jnp.sum(e, axis=-1, keepdims=True))

    # sum over classes, f32 accumulation.
    sum_x = jnp.sum(x, axis=-1, keepdims=True, dtype=jnp.float32)

    # x[target] via one-hot compare against a lane iota; compare/select in the
    # input dtype, accumulate in f32.
    col_ids = lax.broadcasted_iota(jnp.int32, (tn, c), 1)
    tgt = t_ref[...]                                  # (tile_n, 1) int32
    x_t = jnp.sum(jnp.where(col_ids == tgt, x, 0), axis=-1, keepdims=True,
                  dtype=jnp.float32)

    loss = lse - (on_val - off_val) * x_t - off_val * sum_x   # (tile_n, 1) f32

    # Mask out-of-range rows of the last (partial) block before reducing, so
    # garbage / NaN in the padded region never reaches the block sum.
    row_ids = pl.program_id(0) * tn + lax.broadcasted_iota(jnp.int32, (tn, 1), 0)
    loss = jnp.where(row_ids < n_rows, loss, jnp.float32(0.0))

    partial = jnp.sum(loss, axis=0, keepdims=True)            # (1, 1)
    o_ref[...] = jnp.broadcast_to(partial, o_ref.shape)       # lane-dense (1, 128)


def _pick_tile_n(n: int, c: int, itemsize: int) -> int:
    """Row tile sized so each grid step moves ~4 MiB of logits in the input dtype."""
    mult = max(8, 32 // itemsize)            # sublane packing: f32 -> 8, bf16 -> 16
    c_lanes = pl.cdiv(c, 128) * 128          # lane padding in VMEM
    budget_bytes = 4 * 1024 * 1024           # actual HBM bytes per step
    cand = budget_bytes // (c_lanes * itemsize)
    cand = max(mult, (cand // mult) * mult)
    cand = min(cand, 4096)
    if n <= cand:
        return n                              # single full-extent block (always legal)
    return cand


def _vmem_limit_bytes(tile_n: int, c: int, itemsize: int) -> int:
    """Derive the scoped-VMEM limit from the actual double-buffered footprint."""
    c_lanes = pl.cdiv(c, 128) * 128
    in_block = tile_n * c_lanes * itemsize            # logits block
    tgt_block = tile_n * 128 * 4                      # (tile_n, 1) int32, lane-padded
    out_block = 8 * 128 * 4                           # (1, 128) f32, sublane-padded
    f32_temp = tile_n * c_lanes * 4                   # exp-pass temporary
    total = 2 * (in_block + tgt_block + out_block) + f32_temp
    total = int(total * 1.5) + (1 << 20)              # headroom for compiler scratch
    return min(max(total, 8 * 1024 * 1024), 64 * 1024 * 1024)


def _dimension_semantics(num_blocks: int):
    """CORE_PARALLEL on v7x (engage both TensorCores); plain parallel elsewhere."""
    try:
        kind = jax.devices()[0].device_kind.lower()
    except Exception:  # pragma: no cover - defensive
        kind = ""
    core_parallel = getattr(pltpu, "CORE_PARALLEL", None)
    if "v7" in kind and num_blocks > 1 and core_parallel is not None:
        return (core_parallel,)
    return ("parallel",)


def label_smoothing_cross_entropy(logits, target, smoothing: float = 0.1,
                                  tile_n: int | None = None):
    """Pallas equivalent of LabelSmoothingCrossEntropy.forward.

    logits: (..., C) float array, target: (...,) integer class indices.
    Returns a scalar float32 loss (mean over all rows).
    """
    c = logits.shape[-1]
    logits2d = logits.reshape(-1, c)
    n = logits2d.shape[0]
    tgt2d = target.reshape(-1).astype(jnp.int32).reshape(n, 1)

    itemsize = jnp.dtype(logits2d.dtype).itemsize
    if tile_n is None:
        tile_n = _pick_tile_n(n, c, itemsize)
    num_blocks = pl.cdiv(n, tile_n)

    # TODO(synk): for vocab-scale C (>= 64K classes) add a class-chunk grid axis
    # with an online (flash-style) logsumexp so the per-step block fits v7x's
    # 64 MiB VMEM instead of holding full-C rows.

    kernel = functools.partial(_ls_ce_kernel, smoothing=float(smoothing), n_rows=n)

    partials = pl.pallas_call(
        kernel,
        out_shape=jax.ShapeDtypeStruct((num_blocks, 128), jnp.float32),
        grid_spec=pltpu.PrefetchScalarGridSpec(
            num_scalar_prefetch=0,
            grid=(num_blocks,),
            in_specs=[
                pl.BlockSpec((tile_n, c), lambda i: (i, 0)),
                pl.BlockSpec((tile_n, 1), lambda i: (i, 0)),
            ],
            out_specs=pl.BlockSpec((1, 128), lambda i: (i, 0)),
        ),
        compiler_params=pltpu.CompilerParams(
            dimension_semantics=_dimension_semantics(num_blocks),
            vmem_limit_bytes=_vmem_limit_bytes(tile_n, c, itemsize),
        ),
    )(logits2d, tgt2d)

    return jnp.sum(partials[:, 0]) / jnp.float32(n)


def _reference(logits, target, smoothing=0.1):
    """Pure-JAX reference mirroring the PyTorch module."""
    c = logits.shape[-1]
    log_probs = jax.nn.log_softmax(logits.astype(jnp.float32), axis=-1)
    off = smoothing / (c - 1)
    weight = jnp.full(log_probs.shape, off, dtype=jnp.float32)
    one_hot = jax.nn.one_hot(target, c, dtype=jnp.float32)
    weight = weight * (1.0 - one_hot) + one_hot * (1.0 - smoothing)
    return jnp.mean(jnp.sum(-weight * log_probs, axis=-1))


if __name__ == "__main__":
    key = jax.random.PRNGKey(0)
    k1, k2 = jax.random.split(key)

    N, C = 8, 32                      # small shapes: batch=8, classes=32
    logits = jax.random.normal(k1, (N, C), dtype=jnp.float32)
    target = jax.random.randint(k2, (N,), 0, C, dtype=jnp.int32)

    loss = label_smoothing_cross_entropy(logits, target, smoothing=0.1)
    loss = jax.block_until_ready(loss)

    ref = _reference(logits, target, smoothing=0.1)
    assert jnp.allclose(loss, ref, atol=1e-5, rtol=1e-4), (loss, ref)

    print("KERNEL_OK")
</pallas_src>

<mosaic_0001>
module attributes {stable_mosaic.version = 11 : i64} {
  func.func @_ls_ce_kernel(%arg0: i32, %arg1: memref<8x32xf32, #tpu.memory_space<vmem>>, %arg2: memref<8x1xi32, #tpu.memory_space<vmem>>, %arg3: memref<1x128xf32, #tpu.memory_space<vmem>>) attributes {dimension_semantics = [#tpu.dimension_semantics<parallel>], iteration_bounds = array<i64: 1>, scalar_prefetch = 0 : i64, scratch_operands = 0 : i64, tpu.core_type = #tpu.core_type<tc>, window_params = [{transform_indices = @transform_0, window_bounds = array<i64: 8, 32>}, {transform_indices = @transform_1, window_bounds = array<i64: 8, 1>}, {transform_indices = @transform_2, window_bounds = array<i64: 1, 128>}]} {
    %c0 = arith.constant 0 : index
    %c0_0 = arith.constant 0 : index
    %0 = vector.load %arg1[%c0, %c0_0] : memref<8x32xf32, #tpu.memory_space<vmem>>, vector<8x32xf32>
    %cst = arith.constant dense<0xFF800000> : vector<8xf32>
    %1 = vector.multi_reduction <maximumf>, %0, %cst [1] : vector<8x32xf32> to vector<8xf32>
    %2 = vector.shape_cast %1 : vector<8xf32> to vector<8x1xf32>
    %3 = vector.broadcast %2 : vector<8x1xf32> to vector<8x32xf32>
    %4 = arith.subf %0, %3 : vector<8x32xf32>
    %5 = math.exp %4 : vector<8x32xf32>
    %cst_1 = arith.constant dense<0.000000e+00> : vector<8xf32>
    %6 = vector.multi_reduction <add>, %5, %cst_1 [1] : vector<8x32xf32> to vector<8xf32>
    %7 = vector.shape_cast %6 : vector<8xf32> to vector<8x1xf32>
    %8 = math.log %7 : vector<8x1xf32>
    %9 = arith.addf %2, %8 : vector<8x1xf32>
    %cst_2 = arith.constant dense<0.000000e+00> : vector<8xf32>
    %10 = vector.multi_reduction <add>, %0, %cst_2 [1] : vector<8x32xf32> to vector<8xf32>
    %11 = vector.shape_cast %10 : vector<8xf32> to vector<8x1xf32>
    %12 = tpu.iota {dimensions = array<i32: 1>} : vector<8x32xi32>
    %c0_3 = arith.constant 0 : index
    %c0_4 = arith.constant 0 : index
    %13 = vector.load %arg2[%c0_3, %c0_4] : memref<8x1xi32, #tpu.memory_space<vmem>>, vector<8x1xi32>
    %14 = vector.broadcast %13 : vector<8x1xi32> to vector<8x32xi32>
    %15 = arith.cmpi eq, %12, %14 : vector<8x32xi32>
    %c0_i32 = arith.constant 0 : i32
    %16 = arith.sitofp %c0_i32 : i32 to f32
    %17 = vector.broadcast %16 : f32 to vector<8x32xf32>
    %18 = arith.select %15, %0, %17 : vector<8x32xi1>, vector<8x32xf32>
    %cst_5 = arith.constant dense<0.000000e+00> : vector<8xf32>
    %19 = vector.multi_reduction <add>, %18, %cst_5 [1] : vector<8x32xf32> to vector<8xf32>
    %20 = vector.shape_cast %19 : vector<8xf32> to vector<8x1xf32>
    %cst_6 = arith.constant 0.899999976 : f32
    %cst_7 = arith.constant 0.0032258064 : f32
    %21 = arith.subf %cst_6, %cst_7 : f32
    %22 = vector.broadcast %21 : f32 to vector<8x1xf32>
    %23 = arith.mulf %22, %20 : vector<8x1xf32>
    %24 = arith.subf %9, %23 : vector<8x1xf32>
    %cst_8 = arith.constant 0.0032258064 : f32
    %25 = vector.broadcast %cst_8 : f32 to vector<8x1xf32>
    %26 = arith.mulf %25, %11 : vector<8x1xf32>
    %27 = arith.subf %24, %26 : vector<8x1xf32>
    %c8_i32 = arith.constant 8 : i32
    %28 = arith.muli %arg0, %c8_i32 : i32
    %29 = tpu.iota {dimensions = array<i32: 0>} : vector<8x1xi32>
    %30 = vector.broadcast %28 : i32 to vector<8x1xi32>
    %31 = arith.addi %30, %29 : vector<8x1xi32>
    %c8_i32_9 = arith.constant 8 : i32
    %32 = vector.broadcast %c8_i32_9 : i32 to vector<8x1xi32>
    %33 = arith.cmpi slt, %31, %32 : vector<8x1xi32>
    %cst_10 = arith.constant 0.000000e+00 : f32
    %34 = vector.broadcast %cst_10 : f32 to vector<8x1xf32>
    %35 = arith.select %33, %27, %34 : vector<8x1xi1>, vector<8x1xf32>
    %cst_11 = arith.constant dense<0.000000e+00> : vector<1xf32>
    %36 = vector.multi_reduction <add>, %35, %cst_11 [0] : vector<8x1xf32> to vector<1xf32>
    %37 = vector.shape_cast %36 : vector<1xf32> to vector<1x1xf32>
    %38 = vector.shape_cast %37 : vector<1x1xf32> to vector<1x1xf32>
    %39 = vector.broadcast %38 : vector<1x1xf32> to vector<1x128xf32>
    %c0_12 = arith.constant 0 : index
    %c0_13 = arith.constant 0 : index
    %40 = vector.load %arg3[%c0_12, %c0_13] : memref<1x128xf32, #tpu.memory_space<vmem>>, vector<1x128xf32>
    tpu.vector_store %arg3[%c0_12, %c0_13], %39 {strides = array<i32>} : memref<1x128xf32, #tpu.memory_space<vmem>>, vector<1x128xf32>,
    return
  }
  func.func @transform_0(%arg0: i32) -> (i32, i32) {
    %c0_i32 = arith.constant 0 : i32
    %c0_i32_0 = arith.constant 0 : i32
    return %arg0, %c0_i32 : i32, i32
  }
  func.func @transform_1(%arg0: i32) -> (i32, i32) {
    %c0_i32 = arith.constant 0 : i32
    %c0_i32_0 = arith.constant 0 : i32
    return %arg0, %c0_i32 : i32, i32
  }
  func.func @transform_2(%arg0: i32) -> (i32, i32) {
    %c0_i32 = arith.constant 0 : i32
    %c0_i32_0 = arith.constant 0 : i32
    return %arg0, %c0_i32 : i32, i32
  }
}

</mosaic_0001>

<bundles_post_ra>
// kernel: tpu_custom_call.1
= control target key start
LH: loop header
LB: loop body
LE: loop exit
PB: predicated region body
PF: predicated region fallthrough
CT: control target
= control target key end

     0   :  { %vm13_vm0 = vcmask 261120   ;;  %s131_s0 = inlined_call_operand.vmem [shape: f32[8,32], index: 0, kind: input, shape index: {}]   ;;  %s132_s1 = inlined_call_operand.vmem [shape: s32[8,1], index: 1, kind: input, shape index: {}]   ;;  %s133_s2 = inlined_call_operand.hbm [shape: f32[1,128], index: 2, kind: output, shape index: {}]  }
   0x1   :  { %v12_v0 = vld [vmem:[%s131_s0] sm:$0xff] }
   0x2   :  { %7 = vsyncpa [#allocation3], 0  ;;  %v14_v1 = vsel %vm13_vm0, %v12_v0, -inf  ;;  %v101_v2 = vmov 0   ;;  %v31_v3 = vld [vmem:[%s132_s1] sm:$0xff]  ;;  %v29_v7 = vlaneseq  ;;  %v26_v14 = vsel %vm13_vm0, %v12_v0, 0.0 }
   0x3   :  { %74 = vset.pattern.permute.xlu0 %v101_v2  ;;  %s102_s0 = smov [#allocation2]  }
   0x4   :  { %15 = vmax.xlane.f32.xlu0 %v14_v1  ;;  %v30_v8 = vand.u32 127, %v29_v7  ;;  %s64_s1 = sshll.u32 %s102_s0, 4  ;;  %s65_s1 = int_to_ptr.vmem [resolvable:$true] %s64_s1 }
   0x5   :  { %s79_s13 = scalar_lea.vmem %s65_s1, 16  ;;  %s83_s14 = scalar_lea.vmem %s65_s1, 32 }
   0x6   :  { %p80_p0 = scmp.ne.s32.totalorder %s65_s1, %s79_s13  ;;  %p84_p1 = scmp.lt.s32.totalorder %s65_s1, %s65_s1 }
   0x7   :  { %p85_p2 = scmp.lt.s32.totalorder %s83_s14, %s79_s13 }
   0x9   :  { %p86_p3 = por %p85_p2, %p84_p1 }
   0xb   :  { %p87_p4 = pnand %p86_p3, %p80_p0 }
  0x1a   :  { %33 = vperm.xlu0 %74, %v31_v3  }
  0x8d   :  { %v16_v4 = vpop.xlane.xlu0 %15 }
  0x8e   :  { %v17_v5 = vsub.f32 %v12_v0, %v16_v4 }
  0x90   :  { %v18_v6 = vmul.f32 1.442695, %v17_v5 }
  0x92   :  { %75 = vpow2.f32 %v18_v6 }
  0x95   :  { %v34_v9 = vpop.permute.xlu0 %33 }
  0x96   :  { %vm35_vm1 = vcmp.eq.s32.totalorder %v30_v8, %v34_v9 }
  0x97   :  { %v36_v11 = vsel %vm35_vm1, %v12_v0, 0.0 }
  0x98   :  { %v37_v13 = vsel %vm13_vm0, %v36_v11, 0.0 }
  0x9f   :  { %v76_v10 = vpop.eup %75 }
  0xa0   :  { %v20_v12 = vsel %vm13_vm0, %v76_v10, 0.0 }
  0xa1   :  { %21 = vadd.xlane.f32.xlu1 %v20_v12 }
  0xa5   :  { %38 = vadd.xlane.f32.xlu1 %v37_v13 }
  0xa9   :  { %27 = vadd.xlane.f32.xlu1 %v26_v14 }
 0x12a   :  { %v22_v15 = vpop.xlane.xlu1 %21 }
 0x12b   :  { %77 = vlog2.f32 %v22_v15 }
 0x12e   :  { %v39_v16 = vpop.xlane.xlu1 %38 }
 0x12f   :  { %v40_v21 = vmul.f32 0.8967742, %v39_v16 }
 0x132   :  { %v28_v18 = vpop.xlane.xlu1 %27 }
 0x133   :  { %v42_v22 = vmul.f32 0.0032258064, %v28_v18 }
 0x138   :  { %v78_v17 = vpop.eup %77 }
 0x139   :  { %v24_v19 = vmul.f32 0.6931472, %v78_v17 }
 0x13b   :  { %v25_v20 = vadd.f32 %v24_v19, %v16_v4 }
 0x13d   :  { %v41_v23 = vsub.f32 %v25_v20, %v40_v21 }
 0x13f   :  { %v43_v24 = vsub.f32 %v41_v23, %v42_v22 }
 0x141   :  { %v51_v25 = vrot.slane %v43_v24, 4 }
 0x143   :  { %v52_v26 = vadd.f32 %v51_v25, %v43_v24 }
 0x145   :  { %v53_v27 = vrot.slane %v52_v26, 2 }
 0x147   :  { %v54_v28 = vadd.f32 %v53_v27, %v52_v26 }
 0x149   :  { %v55_v29 = vrot.slane %v54_v28, 1 }
 0x14b   :  { %v56_v30 = vadd.f32 %v55_v29, %v54_v28 }
 0x14d   :  { %57 = vst [vmem:[#allocation2] sm:$0x1] %v56_v30 }
 0x14e   :  { %90 = shalt.err (!%p87_p4)
}
 0x14f   :  { %67 = dma.vmem_to_hbm [thread:$0]  %s65_s1, 16, %s133_s2, [#allocation3]  }
 0x150   :  { %99 = dma.done.wait [#allocation3], 16  }
 0x151   :  { %100 = vsyncadd [#allocation3], 4294967280 }
 0x152   :  { %71 = vsyncpa [#allocation3], 1 }

</bundles_post_ra>
